<compile_context>
chip_gen: v5e
topology: v5e:2x2
jax: 0.10.0
libtpu: 0.0.40
codegen_flags: <defaults>
</compile_context>

<pallas_src>
import math

import jax
import jax.numpy as jnp
from jax.experimental import pallas as pl
from jax.experimental.pallas import tpu as pltpu


def _make_cheb_kernel(K, Fin, TV, basis_dtype):
    """Build the kernel body with static K / Fin / TV baked in."""

    def kernel(l_ref, x_ref, w_ref, b_ref, o_ref, basis_ref):
        # l_ref    : (V, V)        dense Laplacian (constant block index -> fetched once)
        # x_ref    : (1, V, Fin)   input slab for batch b
        # w_ref    : (K*Fin, TN)   fused / re-ordered weight tile
        # b_ref    : (1, TN)       f32 bias tile
        # o_ref    : (1, TV, TN)   output slab (lane-dense, TN is a 128-multiple)
        # basis_ref: (V, K*Fin)    Chebyshev basis scratch for the current batch

        # ---- Chebyshev basis: once per batch (first V-tile & first Fout-tile). ----
        # NOTE: this reuse relies on the V-tile / Fout-tile grid axes being
        # "arbitrary" (sequential per core); only the batch axis may be "parallel".
        @pl.when((pl.program_id(1) == 0) & (pl.program_id(2) == 0))
        def _():
            x0 = x_ref[0]                                        # (V, Fin)
            basis_ref[:, 0:Fin] = x0.astype(basis_dtype)         # T_0(L) X
            if K >= 2:                                           # (torch requires K>=2)
                lap = l_ref[...]                                 # native dtype -> MXU
                mxu_dt = lap.dtype
                x_prev = x0.astype(jnp.float32)                  # f32 carry
                x_cur = jnp.dot(lap, x0.astype(mxu_dt),
                                preferred_element_type=jnp.float32)       # T_1(L) X
                basis_ref[:, Fin:2 * Fin] = x_cur.astype(basis_dtype)
                for k in range(2, K):
                    x_next = 2.0 * jnp.dot(lap, x_cur.astype(mxu_dt),
                                           preferred_element_type=jnp.float32) - x_prev
                    basis_ref[:, k * Fin:(k + 1) * Fin] = x_next.astype(basis_dtype)
                    x_prev, x_cur = x_cur, x_next

        # ---- Fused contraction: ONE (TV, K*Fin) @ (K*Fin, TN) MXU dot. ------------
        v0 = pl.multiple_of(pl.program_id(1) * TV, TV)
        xk = basis_ref[pl.ds(v0, TV), :]                         # (TV, K*Fin)
        acc = jnp.dot(xk, w_ref[...], preferred_element_type=jnp.float32)
        acc = acc + b_ref[...]                                   # (1, TN) f32 broadcast
        o_ref[0] = acc.astype(o_ref.dtype)

    return kernel


def _vmem_limit_bytes():
    """Generation-aware scoped-VMEM budget: ~85% of physical, with headroom."""
    try:
        cap = int(pltpu.get_tpu_info().vmem_capacity_bytes)
    except Exception:
        cap = 64 * 1024 * 1024          # conservative fallback (v7x physical size)
    return int(min(cap * 0.85, 112 * 1024 * 1024))


def cheb_conv_pallas(laplacian, inputs, weight, bias=None):
    """laplacian: (V, V) dense, inputs: (B, V, Fin), weight: (K, Fin, Fout),
    bias: (Fout,) or None.  Returns (B, V, Fout)."""
    B, V, Fin = inputs.shape
    K, _, Fout = weight.shape
    KFin = K * Fin

    # Reproduce torch's flatten quirk with ONE fused weight matrix:
    #   out = basis(B*V, Fin*K fin-major) @ weight.view(Fin*K, Fout)
    # Our basis scratch columns are (k-major, fin-minor), so permute the weight rows:
    #   w_fused[k*Fin + fin, :] = weight.view(Fin*K, Fout)[fin*K + k, :]
    w_fused = jnp.transpose(weight.reshape(Fin, K, Fout), (1, 0, 2)).reshape(KFin, Fout)

    # Lane-dense output: pad Fout up to a 128-multiple (sliced off afterwards).
    Fout_pad = ((Fout + 127) // 128) * 128
    if Fout_pad != Fout:
        w_fused = jnp.pad(w_fused, ((0, 0), (0, Fout_pad - Fout)))
    if bias is None:
        bias_f32 = jnp.zeros((Fout,), jnp.float32)
    else:
        bias_f32 = bias.astype(jnp.float32)                      # keep bias in f32
    bias_pad = jnp.pad(bias_f32, (0, Fout_pad - Fout)).reshape(1, Fout_pad)

    # Fout tiling: full width when small, otherwise 128-multiple tiles.
    if Fout_pad <= 512:
        tn = Fout_pad
    elif Fout_pad % 512 == 0:
        tn = 512
    elif Fout_pad % 256 == 0:
        tn = 256
    else:
        tn = 128
    nf = Fout_pad // tn

    # V-row tiling for the contraction/output (basis compute always uses full V).
    if V <= 512:
        tv = V
    else:
        tv = next((t for t in (512, 256, 128) if V % t == 0), V)
    nv = V // tv

    # Basis held in the natural compute dtype (bf16 stays bf16 -> native MXU path).
    basis_dtype = jnp.promote_types(inputs.dtype, weight.dtype)

    grid = (B, nv, nf)
    out_shape = jax.ShapeDtypeStruct((B, V, Fout_pad), inputs.dtype)

    out = pl.pallas_call(
        _make_cheb_kernel(K, Fin, tv, basis_dtype),
        out_shape=out_shape,
        grid_spec=pltpu.PrefetchScalarGridSpec(
            num_scalar_prefetch=0,
            grid=grid,
            in_specs=[
                # Dense Laplacian, constant block index -> DMAed once, stays resident.
                pl.BlockSpec((V, V), lambda b, iv, jf: (0, 0)),
                # Per-batch input slab (only read by the basis phase).
                pl.BlockSpec((1, V, Fin), lambda b, iv, jf: (b, 0, 0)),
                # Fused weight tile (K*Fin, tn).
                pl.BlockSpec((KFin, tn), lambda b, iv, jf: (0, jf)),
                # f32 bias tile.
                pl.BlockSpec((1, tn), lambda b, iv, jf: (0, jf)),
            ],
            out_specs=pl.BlockSpec((1, tv, tn), lambda b, iv, jf: (b, iv, jf)),
            scratch_shapes=[pltpu.VMEM((V, KFin), basis_dtype)],   # lane-dense basis
        ),
        compiler_params=pltpu.CompilerParams(
            # Batch axis may shard across TensorCores; the V-tile / Fout-tile axes
            # MUST stay sequential because they reuse the per-batch basis scratch.
            dimension_semantics=("parallel", "arbitrary", "arbitrary"),
            vmem_limit_bytes=_vmem_limit_bytes(),
        ),
    )(laplacian, inputs, w_fused, bias_pad)

    return out[:, :, :Fout]


def _reference(laplacian, inputs, weight, bias):
    """Pure-JAX literal transcription of the PyTorch cheb_conv (dense Laplacian)."""
    B, V, Fin = inputs.shape
    K, _, Fout = weight.shape
    x0 = jnp.transpose(inputs, (1, 2, 0)).reshape(V, Fin * B)
    xs = [x0]
    if K > 1:
        x1 = laplacian @ x0
        xs.append(x1)
        for _ in range(1, K - 1):
            x2 = 2.0 * (laplacian @ x1) - x0
            xs.append(x2)
            x0, x1 = x1, x2
    stack = jnp.stack(xs, 0).reshape(K, V, Fin, B)
    stack = jnp.transpose(stack, (3, 1, 2, 0)).reshape(B * V, Fin * K)
    wflat = weight.reshape(K * Fin, Fout)
    out = (stack @ wflat).reshape(B, V, Fout)
    if bias is not None:
        out = out + bias
    return out


if __name__ == "__main__":
    key = jax.random.PRNGKey(0)
    B, V, Fin, Fout, K = 2, 64, 8, 32, 3
    k1, k2, k3 = jax.random.split(key, 3)

    # Deterministic dense stand-in for the sparse sphere Laplacian: ring-graph
    # Laplacian rescaled to eigenvalues in [-1, 1] (as deepsphere does).
    eye = jnp.eye(V, dtype=jnp.float32)
    adj = jnp.roll(eye, 1, axis=1) + jnp.roll(eye, -1, axis=1)
    lap = (eye * 2.0 - adj) / 2.0 - eye                      # (V, V)

    x = jax.random.normal(k1, (B, V, Fin), dtype=jnp.float32)
    std = math.sqrt(2.0 / (Fin * K))
    weight = std * jax.random.normal(k2, (K, Fin, Fout), dtype=jnp.float32)
    bias = 0.1 * jax.random.normal(k3, (Fout,), dtype=jnp.float32)

    out = cheb_conv_pallas(lap, x, weight, bias)
    out = jax.block_until_ready(out)

    ref = _reference(lap, x, weight, bias)
    assert out.shape == (B, V, Fout), out.shape
    assert jnp.allclose(out, ref, rtol=1e-2, atol=1e-2), (
        "mismatch vs reference, max |diff| = %s" % float(jnp.max(jnp.abs(out - ref)))
    )

    print("KERNEL_OK")
</pallas_src>

<mosaic_0001>
module attributes {stable_mosaic.version = 11 : i64} {
  func.func @kernel(%arg0: i32, %arg1: i32, %arg2: i32, %arg3: memref<64x64xf32, #tpu.memory_space<vmem>>, %arg4: memref<1x64x8xf32, #tpu.memory_space<vmem>>, %arg5: memref<24x128xf32, #tpu.memory_space<vmem>>, %arg6: memref<1x128xf32, #tpu.memory_space<vmem>>, %arg7: memref<1x64x128xf32, #tpu.memory_space<vmem>>, %arg8: memref<64x24xf32, #tpu.memory_space<vmem>>) attributes {dimension_semantics = [#tpu.dimension_semantics<parallel>, #tpu.dimension_semantics<arbitrary>, #tpu.dimension_semantics<arbitrary>], iteration_bounds = array<i64: 2, 1, 1>, scalar_prefetch = 0 : i64, scratch_operands = 1 : i64, tpu.core_type = #tpu.core_type<tc>, window_params = [{pipeline_mode = #tpu.pipeline_mode<synchronous>, transform_indices = @transform_0, window_bounds = array<i64: 64, 64>}, {transform_indices = @transform_1, window_bounds = array<i64: 1, 64, 8>}, {transform_indices = @transform_2, window_bounds = array<i64: 24, 128>}, {transform_indices = @transform_3, window_bounds = array<i64: 1, 128>}, {transform_indices = @transform_4, window_bounds = array<i64: 1, 64, 128>}]} {
    %c0_i32 = arith.constant 0 : i32
    %0 = arith.cmpi eq, %arg1, %c0_i32 : i32
    %c0_i32_0 = arith.constant 0 : i32
    %1 = arith.cmpi eq, %arg2, %c0_i32_0 : i32
    %2 = arith.andi %0, %1 : i1
    %3 = arith.extui %2 : i1 to i32
    %c0_i32_1 = arith.constant 0 : i32
    %4 = arith.cmpi ne, %3, %c0_i32_1 : i32
    scf.if %4 {
      %c0_9 = arith.constant 0 : index
      %c0_10 = arith.constant 0 : index
      %c0_11 = arith.constant 0 : index
      %17 = vector.load %arg4[%c0_9, %c0_10, %c0_11] : memref<1x64x8xf32, #tpu.memory_space<vmem>>, vector<1x64x8xf32>
      %18 = vector.shape_cast %17 : vector<1x64x8xf32> to vector<64x8xf32>
      %c0_12 = arith.constant 0 : index
      %c0_13 = arith.constant 0 : index
      %19 = vector.load %arg8[%c0_12, %c0_13] : memref<64x24xf32, #tpu.memory_space<vmem>>, vector<64x8xf32>
      tpu.vector_store %arg8[%c0_12, %c0_13], %18 {strides = array<i32>} : memref<64x24xf32, #tpu.memory_space<vmem>>, vector<64x8xf32>,
      %c0_14 = arith.constant 0 : index
      %c0_15 = arith.constant 0 : index
      %20 = vector.load %arg3[%c0_14, %c0_15] : memref<64x64xf32, #tpu.memory_space<vmem>>, vector<64x64xf32>
      %cst_16 = arith.constant dense<0.000000e+00> : vector<64x8xf32>
      %21 = tpu.matmul %20, %18, %cst_16 {dimension_numbers = #tpu.dot_dimension_numbers<[1], [0], [0], [1], [0, 0, 1, 1], [], []>} : vector<64x64xf32>, vector<64x8xf32>, vector<64x8xf32> -> vector<64x8xf32>
      %c0_17 = arith.constant 0 : index
      %c8 = arith.constant 8 : index
      %22 = vector.load %arg8[%c0_17, %c8] : memref<64x24xf32, #tpu.memory_space<vmem>>, vector<64x8xf32>
      tpu.vector_store %arg8[%c0_17, %c8], %21 {strides = array<i32>} : memref<64x24xf32, #tpu.memory_space<vmem>>, vector<64x8xf32>,
      %cst_18 = arith.constant dense<0.000000e+00> : vector<64x8xf32>
      %23 = tpu.matmul %20, %21, %cst_18 {dimension_numbers = #tpu.dot_dimension_numbers<[1], [0], [0], [1], [0, 0, 1, 1], [], []>} : vector<64x64xf32>, vector<64x8xf32>, vector<64x8xf32> -> vector<64x8xf32>
      %cst_19 = arith.constant 2.000000e+00 : f32
      %24 = vector.broadcast %cst_19 : f32 to vector<64x8xf32>
      %25 = arith.mulf %24, %23 : vector<64x8xf32>
      %26 = arith.subf %25, %18 : vector<64x8xf32>
      %c0_20 = arith.constant 0 : index
      %c16 = arith.constant 16 : index
      %27 = vector.load %arg8[%c0_20, %c16] : memref<64x24xf32, #tpu.memory_space<vmem>>, vector<64x8xf32>
      tpu.vector_store %arg8[%c0_20, %c16], %26 {strides = array<i32>} : memref<64x24xf32, #tpu.memory_space<vmem>>, vector<64x8xf32>,
    } else {
    }
    %c64_i32 = arith.constant 64 : i32
    %5 = arith.muli %arg1, %c64_i32 : i32
    %6 = tpu.assume_multiple %5, 64 : i32
    %7 = arith.index_cast %6 : i32 to index
    %c0 = arith.constant 0 : index
    %8 = vector.load %arg8[%7, %c0] : memref<64x24xf32, #tpu.memory_space<vmem>>, vector<64x24xf32>
    %c0_2 = arith.constant 0 : index
    %c0_3 = arith.constant 0 : index
    %9 = vector.load %arg5[%c0_2, %c0_3] : memref<24x128xf32, #tpu.memory_space<vmem>>, vector<24x128xf32>
    %cst = arith.constant dense<0.000000e+00> : vector<64x128xf32>
    %10 = tpu.matmul %8, %9, %cst {dimension_numbers = #tpu.dot_dimension_numbers<[1], [0], [0], [1], [0, 0, 1, 1], [], []>} : vector<64x24xf32>, vector<24x128xf32>, vector<64x128xf32> -> vector<64x128xf32>
    %c0_4 = arith.constant 0 : index
    %c0_5 = arith.constant 0 : index
    %11 = vector.load %arg6[%c0_4, %c0_5] : memref<1x128xf32, #tpu.memory_space<vmem>>, vector<1x128xf32>
    %12 = vector.broadcast %11 : vector<1x128xf32> to vector<64x128xf32>
    %13 = arith.addf %10, %12 : vector<64x128xf32>
    %c0_6 = arith.constant 0 : index
    %c0_7 = arith.constant 0 : index
    %c0_8 = arith.constant 0 : index
    %14 = vector.load %arg7[%c0_6, %c0_7, %c0_8] : memref<1x64x128xf32, #tpu.memory_space<vmem>>, vector<1x64x128xf32>
    %15 = vector.shape_cast %14 : vector<1x64x128xf32> to vector<64x128xf32>
    %16 = vector.shape_cast %13 : vector<64x128xf32> to vector<1x64x128xf32>
    tpu.vector_store %arg7[%c0_6, %c0_7, %c0_8], %16 {strides = array<i32>} : memref<1x64x128xf32, #tpu.memory_space<vmem>>, vector<1x64x128xf32>,
    return
  }
  func.func @transform_0(%arg0: i32, %arg1: i32, %arg2: i32) -> (i32, i32) {
    %c0_i32 = arith.constant 0 : i32
    %c0_i32_0 = arith.constant 0 : i32
    %c0_i32_1 = arith.constant 0 : i32
    return %c0_i32, %c0_i32_0 : i32, i32
  }
  func.func @transform_1(%arg0: i32, %arg1: i32, %arg2: i32) -> (i32, i32, i32) {
    %c0_i32 = arith.constant 0 : i32
    %c0_i32_0 = arith.constant 0 : i32
    %c0_i32_1 = arith.constant 0 : i32
    return %arg0, %c0_i32, %c0_i32_0 : i32, i32, i32
  }
  func.func @transform_2(%arg0: i32, %arg1: i32, %arg2: i32) -> (i32, i32) {
    %c0_i32 = arith.constant 0 : i32
    %c0_i32_0 = arith.constant 0 : i32
    return %c0_i32, %arg2 : i32, i32
  }
  func.func @transform_3(%arg0: i32, %arg1: i32, %arg2: i32) -> (i32, i32) {
    %c0_i32 = arith.constant 0 : i32
    %c0_i32_0 = arith.constant 0 : i32
    return %c0_i32, %arg2 : i32, i32
  }
  func.func @transform_4(%arg0: i32, %arg1: i32, %arg2: i32) -> (i32, i32, i32) {
    %c0_i32 = arith.constant 0 : i32
    return %arg0, %arg1, %arg2 : i32, i32, i32
  }
}

</mosaic_0001>

<bundles_post_ra>
// kernel: tpu_custom_call.1
= control target key start
LH: loop header
LB: loop body
LE: loop exit
PB: predicated region body
PF: predicated region fallthrough
CT: control target
= control target key end

     0   :  { %9 = vsyncpa [#allocation4], 0  ;;  %s1182_s0 = inlined_call_operand.vmem [shape: f32[64,64], index: 0, kind: input, shape index: {}]   ;;  %s1183_s1 = inlined_call_operand.vmem [shape: f32[2,64,8], index: 1, kind: input, shape index: {}]   ;;  %s1184_s2 = inlined_call_operand.vmem [shape: f32[24,128], index: 2, kind: input, shape index: {}]   ;;  %s1185_s3 = inlined_call_operand.vmem [shape: f32[1,128], index: 3, kind: input, shape index: {}]   ;;  %s1186_s4 = inlined_call_operand.hbm [shape: f32[2,64,128], index: 4, kind: output, shape index: {}]  }
   0x1   :  { %11 = vsyncpa [#allocation4 + $0x1], 0  ;;  %s930_s15 = smov 0   ;;  %s932_s16 = smov 0  }
   0x2   :  { %s934_s17 = smov 0   ;;  %s936_s18 = smov 0  }
   0x3   :  { %s938_s19 = smov 0   ;;  %s940_s20 = smov 0  }
   0x4 LB: > { %s703_s21 = sadd.s32 4294967295, %s900_s20   ;;  %s704_s22 = sadd.s32 4294967294, %s900_s20   ;;  %s900_s20 = sphi %s940_s20, %s17_s20   ;;  %s896_s19 = sphi %s938_s19, %s1193_s19   ;;  %s892_s18 = sphi %s936_s18, %s1192_s18   ;;  %s888_s17 = sphi %s934_s17, %s1191_s17   ;;  %s884_s16 = sphi %s932_s16, %s1190_s16   ;;  %s880_s15 = sphi %s930_s15, %s1189_s15  }
   0x5   : > { %s36_s23 = sadd.s32 1, %s896_s19  ;;  %s146_s24 = sadd.s32 1, %s888_s17 }
   0x6   : > { %p38_p0 = scmp.ge.s32.totalorder %s36_s23, 2  ;;  %p156_p1 = scmp.ne.s32.totalorder %s888_s17, %s884_s16 }
   0x7   : > { %p157_p2 = scmp.eq.s32.totalorder %s703_s21, 1  ;;  %p162_p3 = scmp.ne.s32.totalorder %s884_s16, %s880_s15 }
   0x8   : > { %s1195_s23 = smov (%p38_p0, %s36_s23), 0  ;;  %p163_p5 = scmp.eq.s32.totalorder %s704_s22, 1 }
   0x9   : > { %p970_p4 = por %p157_p2, %p156_p1  ;;  %s139_s26 = ssub.s32 %s896_s19, %s1195_s23 }
   0xa   : > { %p709_p6 = scmp.ge.s32.totalorder %s900_s20, 1  ;;  %p144_p7 = scmp.eq.s32.totalorder %s139_s26, 0 }
   0xb   : > { %p977_p8 = por %p163_p5, %p162_p3  ;;  %p205_p9 = scmp.lt.s32.totalorder %s900_s20, 3 }
   0xc   : > { %s983_s28 = scalar_select %p144_p7, %s888_s17, %s146_s24  }
   0xd   : > { %p206_p10 = pnand %p709_p6, %p205_p9 }
   0xe   : > { %p238_p11 = scmp.lt.s32.totalorder (!%p206_p10), %s892_s18, 1  ;;  %s902_s8 = smov (!%p206_p10), 8  }
   0xf   : > { %209 = sbr.rel (%p206_p10) target bundleno = 658 (0x292), region = 36  ;;  %s903_s9 = smov (!%p206_p10), 16  }
  0x10   : > { %s235_s22 = sand.u32 (!%p206_p10), 1, %s884_s16   ;;  %s743_s5 = sshll.u32 (!%p206_p10), %s892_s18, 6 }
  0x11   : > { %s710_s24 = sshll.u32 (!%p206_p10), %s235_s22, 6  ;;  %s579_s12 = scalar_lea.sflag (!%p206_p10), [#allocation4], %s235_s22 }
  0x14   : > { %s239_s29 = scalar_select %p238_p11, %s892_s18, 1  ;;  %v274_v8 = vld [vmem:[%s1182_s0] sm:$0xff]  ;;  %vm282_vm0 = vcmask 523264   ;;  %v280_v9 = vld [vmem:[%s1182_s0 + $0x30] sm:$0xff]  ;;  %v275_v10 = vld [vmem:[%s1182_s0 + $0x8] sm:$0xff]  ;;  %vm265_vm1 = vcmask 64512  }
  0x15   : > { %v281_v11 = vld [vmem:[%s1182_s0 + $0x38] sm:$0xff]  ;;  %v276_v12 = vld [vmem:[%s1182_s0 + $0x10] sm:$0xff]  ;;  %v278_v14 = vld [vmem:[%s1182_s0 + $0x20] sm:$0xff]  ;;  %vm380_vm2 = vcmask 130112   ;;  %vm478_vm3 = vcmask 195712   ;;  %vm504_vm4 = vcmask 195584  }
  0x16   : > { %s742_s30 = sshll.u32 %s239_s29, 6  ;;  %v277_v13 = vld [vmem:[%s1182_s0 + $0x18] sm:$0xff]  ;;  %v279_v15 = vld [vmem:[%s1182_s0 + $0x28] sm:$0xff]  ;;  %v499_v51 = vld [vmem:[%s1184_s2 + $0x10] sm:$0xff] }
  0x17   : > { %s242_s7 = scalar_lea.vmem %s1183_s1, %s742_s30  ;;  %v498_v52 = vld [vmem:[%s1184_s2 + $0x8] sm:$0xff]  ;;  %542 = vmatpush.msra.mxu2 %v499_v51  ;;  %v497_v53 = vld [vmem:[%s1184_s2] sm:$0xff]  ;;  %s237_s30 = scalar_lea.vmem [#allocation3], %s710_s24 }
  0x18   : > { %v990_v0 = vld [vmem:[%s242_s7 + $0x38] sm:$0xff]  ;;  %v992_v1 = vld [vmem:[%s242_s7 + $0x30] sm:$0xff]  ;;  %v996_v2 = vld [vmem:[%s242_s7 + $0x28] sm:$0xff]  ;;  %s594_s10 = sshll.u32 %s237_s30, 4  ;;  %s842_s24 = scalar_lea.hbm %s1186_s4, 128  ;;  %s595_s10 = int_to_ptr.vmem [resolvable:$true] %s594_s10 }
  0x19   : > { %315 = vmatpush.msra.mxu0 %v990_v0  ;;  %744 = vmatpush.msra.mxu3 %v990_v0  ;;  %v1000_v3 = vld [vmem:[%s242_s7 + $0x20] sm:$0xff]  ;;  %v1004_v4 = vld [vmem:[%s242_s7 + $0x18] sm:$0xff]  ;;  %v1008_v5 = vld [vmem:[%s242_s7 + $0x10] sm:$0xff]  ;;  %271 = vst.msk [vmem:[#allocation2 + $0x28] sm:$0xff] %vm265_vm1, %v996_v2 }
  0x1a   : > { %v1012_v6 = vld [vmem:[%s242_s7 + $0x8] sm:$0xff]  ;;  %v1016_v7 = vld [vmem:[%s242_s7] sm:$0xff]  ;;  %268 = vst.msk [vmem:[#allocation2 + $0x10] sm:$0xff] %vm265_vm1, %v1008_v5  ;;  %543 = vmatpush.msra.mxu2 %v498_v52 }
  0x1b   : > { %316 = vmatpush.msra.mxu0 %v992_v1  ;;  %745 = vmatpush.msra.mxu3 %v992_v1  ;;  %266 = vst.msk [vmem:[#allocation2] sm:$0xff] %vm265_vm1, %v1016_v7 }
  0x1c   : > { %267 = vst.msk [vmem:[#allocation2 + $0x8] sm:$0xff] %vm265_vm1, %v1012_v6  ;;  %544 = vmatpush.msra.mxu2 %v497_v53 }
  0x1d   : > { %317 = vmatpush.msra.mxu0 %v996_v2  ;;  %746 = vmatpush.msra.mxu3 %v996_v2  ;;  %269 = vst.msk [vmem:[#allocation2 + $0x18] sm:$0xff] %vm265_vm1, %v1004_v4 }
  0x1e   : > { %270 = vst.msk [vmem:[#allocation2 + $0x20] sm:$0xff] %vm265_vm1, %v1000_v3 }
  0x1f   : > { %318 = vmatpush.msra.mxu0 %v1000_v3  ;;  %747 = vmatpush.msra.mxu3 %v1000_v3  ;;  %272 = vst.msk [vmem:[#allocation2 + $0x30] sm:$0xff] %vm265_vm1, %v992_v1 }
  0x20   : > { %273 = vst.msk [vmem:[#allocation2 + $0x38] sm:$0xff] %vm265_vm1, %v990_v0 }
  0x21   : > { %319 = vmatpush.msra.mxu0 %v1004_v4  ;;  %748 = vmatpush.msra.mxu3 %v1004_v4 }
  0x23   : > { %320 = vmatpush.msra.mxu0 %v1008_v5  ;;  %749 = vmatpush.msra.mxu3 %v1008_v5 }
  0x25   : > { %321 = vmatpush.msra.mxu0 %v1012_v6  ;;  %750 = vmatpush.msra.mxu3 %v1012_v6 }
  0x27   : > { %322 = vmatpush.msra.mxu0 %v1016_v7  ;;  %751 = vmatpush.msra.mxu3 %v1016_v7 }
  0x28   : > { %713 = vmatmul.msk.f32.vlgmr.msra.gmra.mxu0 %vm282_vm0, %v274_v8  ;;  %719 = vmatmul.msk.f32.vlgmr.msra.gmra.mxu3 %vm282_vm0, %v280_v9 }
  0x30   : > { %714 = vmatmul.msk.f32.gmra.mxu0 %vm282_vm0, %v275_v10  ;;  %720 = vmatmul.msk.f32.gmra.mxu3 %vm282_vm0, %v281_v11 }
  0x38   : > { %715 = vmatmul.msk.f32.gmra.mxu0 %vm282_vm0, %v276_v12 }
  0x40   : > { %716 = vmatmul.msk.f32.gmra.mxu0 %vm282_vm0, %v277_v13 }
  0x48   : > { %717 = vmatmul.msk.f32.gmra.mxu0 %vm282_vm0, %v278_v14 }
  0x50   : > { %718 = vmatmul.msk.f32.gmra.mxu0 %vm282_vm0, %v279_v15 }
  0xa5   : > { %v324_v16 = vpop.f32.mrf.mxu0 }
  0xa6   : > { %356 = vrot.lane.b32.xlu0 %v324_v16, %s902_s8 }
  0xab   : > { %v1055_v17 = vpop.f32.mrf.mxu3 }
  0xad   : > { %v327_v18 = vpop.f32.mrf.mxu0 }
  0xae   : > { %358 = vrot.lane.b32.xlu1 %v327_v18, %s902_s8 }
  0xb3   : > { %v1058_v19 = vpop.f32.mrf.mxu3 }
  0xb4   : > { %397 = vmatpush.msra.mxu1 %v1058_v19  ;;  %752 = vmatpush.msrb.mxu3 %v1058_v19 }
  0xb5   : > { %v330_v20 = vpop.f32.mrf.mxu0 }
  0xb6   : > { %360 = vrot.lane.b32.xlu2 %v330_v20, %s902_s8  ;;  %398 = vmatpush.msra.mxu1 %v1055_v17 }
  0xb7   : > { %753 = vmatpush.msrb.mxu3 %v1055_v17 }
  0xbd   : > { %v333_v21 = vpop.f32.mrf.mxu0 }
  0xc5   : > { %v336_v22 = vpop.f32.mrf.mxu0 }
  0xcd   : > { %v339_v23 = vpop.f32.mrf.mxu0 }
  0xce   : > { %399 = vmatpush.msra.mxu1 %v339_v23  ;;  %754 = vmatpush.msrb.mxu3 %v339_v23 }
  0xd0   : > { %400 = vmatpush.msra.mxu1 %v336_v22  ;;  %755 = vmatpush.msrb.mxu3 %v336_v22 }
  0xd2   : > { %401 = vmatpush.msra.mxu1 %v333_v21  ;;  %756 = vmatpush.msrb.mxu3 %v333_v21 }
  0xd4   : > { %402 = vmatpush.msra.mxu1 %v330_v20  ;;  %757 = vmatpush.msrb.mxu3 %v330_v20 }
  0xd6   : > { %403 = vmatpush.msra.mxu1 %v327_v18  ;;  %758 = vmatpush.msrb.mxu3 %v327_v18 }
  0xd8   : > { %404 = vmatpush.msra.mxu1 %v324_v16  ;;  %759 = vmatpush.msrb.mxu3 %v324_v16 }
  0xd9   : > { %721 = vmatmul.msk.f32.vlgmr.msra.gmra.mxu1 %vm282_vm0, %v274_v8  ;;  %727 = vmatmul.msk.f32.vlgmr.msrb.gmra.mxu3 %vm282_vm0, %v280_v9 }
  0xda   : > { %760 = vmatpush.msra.mxu3 %v499_v51 }
  0xdc   : > { %761 = vmatpush.msra.mxu3 %v498_v52 }
  0xde   : > { %762 = vmatpush.msra.mxu3 %v497_v53 }
  0xe1   : > { %722 = vmatmul.msk.f32.gmra.mxu1 %vm282_vm0, %v275_v10  ;;  %728 = vmatmul.msk.f32.gmra.mxu3 %vm282_vm0, %v281_v11  ;;  %v821_v11 = vld [vmem:[%s1185_s3] ss:$0 sm:$0xff] }
  0xe9   : > { %723 = vmatmul.msk.f32.gmra.mxu1 %vm282_vm0, %v276_v12 }
  0xf1   : > { %724 = vmatmul.msk.f32.gmra.mxu1 %vm282_vm0, %v277_v13 }
  0xf9   : > { %725 = vmatmul.msk.f32.gmra.mxu1 %vm282_vm0, %v278_v14 }
 0x101   : > { %726 = vmatmul.msk.f32.gmra.mxu1 %vm282_vm0, %v279_v15 }
 0x110   : > { %v361_v24 = vpop.permute.xlu2 %360 }
 0x111   : > { %383 = vst.msk [vmem:[#allocation2 + $0x10] sm:$0xff] %vm380_vm2, %v361_v24 }
 0x118   : > { %v357_v25 = vpop.permute.xlu0 %356 }
 0x119   : > { %381 = vst.msk [vmem:[#allocation2] sm:$0xff] %vm380_vm2, %v357_v25 }
 0x120   : > { %v359_v26 = vpop.permute.xlu1 %358 }
 0x121   : > { %382 = vst.msk [vmem:[#allocation2 + $0x8] sm:$0xff] %vm380_vm2, %v359_v26 }
 0x156   : > { %v406_v27 = vpop.f32.mrf.mxu1 }
 0x157   : > { %v430_v28 = vmul.f32 2.0, %v406_v27 }
 0x159   : > { %v438_v29 = vsub.f32 %v430_v28, %v1016_v7 }
 0x15b   : > { %454 = vrot.lane.b32.xlu0 %v438_v29, %s903_s9 }
 0x15c   : > { %v424_v40 = vpop.f32.mrf.mxu3 }
 0x15d   : > { %v436_v48 = vmul.f32 2.0, %v424_v40 }
 0x15e   : > { %v409_v30 = vpop.f32.mrf.mxu1 }
 0x15f   : > { %v431_v31 = vmul.f32 2.0, %v409_v30  ;;  %v444_v50 = vsub.f32 %v436_v48, %v992_v1 }
 0x161   : > { %v439_v32 = vsub.f32 %v431_v31, %v1012_v6 }
 0x163   : > { %362 = vrot.lane.b32.xlu0 %v333_v21, %s902_s8  ;;  %456 = vrot.lane.b32.xlu1 %v439_v32, %s903_s9 }
 0x164   : > { %v427_v45 = vpop.f32.mrf.mxu3 }
 0x165   : > { %v437_v47 = vmul.f32 2.0, %v427_v45 }
 0x166   : > { %v412_v33 = vpop.f32.mrf.mxu1 }
 0x167   : > { %v432_v34 = vmul.f32 2.0, %v412_v33  ;;  %v445_v49 = vsub.f32 %v437_v47, %v990_v0 }
 0x169   : > { %v440_v35 = vsub.f32 %v432_v34, %v1008_v5 }
 0x16b   : > { %458 = vrot.lane.b32.xlu2 %v440_v35, %s903_s9 }
 0x16e   : > { %v415_v36 = vpop.f32.mrf.mxu1 }
 0x16f   : > { %v433_v37 = vmul.f32 2.0, %v415_v36 }
 0x171   : > { %v441_v38 = vsub.f32 %v433_v37, %v1004_v4 }
 0x173   : > { %364 = vrot.lane.b32.xlu2 %v336_v22, %s902_s8  ;;  %460 = vrot.lane.b32.xlu1 %v441_v38, %s903_s9 }
 0x176   : > { %v418_v39 = vpop.f32.mrf.mxu1 }
 0x177   : > { %v434_v41 = vmul.f32 2.0, %v418_v39 }
 0x179   : > { %v442_v42 = vsub.f32 %v434_v41, %v1000_v3 }
 0x17b   : > { %366 = vrot.lane.b32.xlu1 %v339_v23, %s902_s8  ;;  %462 = vrot.lane.b32.xlu0 %v442_v42, %s903_s9 }
 0x17e   : > { %v421_v43 = vpop.f32.mrf.mxu1 }
 0x17f   : > { %v435_v44 = vmul.f32 2.0, %v421_v43 }
 0x181   : > { %v443_v46 = vsub.f32 %v435_v44, %v996_v2 }
 0x183   : > { %370 = vrot.lane.b32.xlu1 %v1058_v19, %s902_s8  ;;  %368 = vrot.lane.b32.xlu0 %v1055_v17, %s902_s8 }
 0x184   : > { %464 = vrot.lane.b32.xlu2 %v443_v46, %s903_s9 }
 0x18b   : > { %468 = vrot.lane.b32.xlu0 %v445_v49, %s903_s9 }
 0x18c   : > { %466 = vrot.lane.b32.xlu2 %v444_v50, %s903_s9  ;;  %s593_s9 = scalar_lea.hbm %s1186_s4, %s743_s5 }
 0x18d   : > { %s596_s11 = sshll.u32 %s593_s9, 4  ;;  %s597_s11 = int_to_ptr.hbm [resolvable:$true] %s596_s11 }
 0x18e   : > { %s836_s18 = sshra.s32 %s597_s11, 4  ;;  %s837_s18 = int_to_ptr.hbm [resolvable:$true] %s836_s18 }
 0x18f   : > { %s838_s13 = scalar_lea.hbm %s837_s18, 64  ;;  %p843_p1 = scmp.lt.s32.totalorder %s837_s18, %s1186_s4 }
 0x190   : > { %p839_p12 = scmp.ne.s32.totalorder %s837_s18, %s838_s13  ;;  %p844_p2 = scmp.lt.s32.totalorder %s842_s24, %s838_s13 }
 0x192   : > { %p840_p13 = pnand %p839_p12, %p970_p4  ;;  %p845_p3 = por %p844_p2, %p843_p1 }
 0x194   : > { %p841_p0 = pneg %p840_p13 }
 0x196   : > { %p846_p5 = pnand %p845_p3, %p841_p0 }
 0x1c5   : > { %v459_v54 = vpop.permute.xlu2 %458 }
 0x1c6   : > { %481 = vst.msk [vmem:[#allocation2 + $0x10] sm:$0xff] %vm478_vm3, %v459_v54 }
 0x1cd   : > { %v455_v55 = vpop.permute.xlu0 %454  ;;  %v365_v56 = vpop.permute.xlu2 %364  ;;  %v491_v62 = vld [vmem:[#allocation2 + $0x10] sm:$0xff] }
 0x1ce   : > { %479 = vst.msk [vmem:[#allocation2] sm:$0xff] %vm478_vm3, %v455_v55 }
 0x1cf   : > { %385 = vst.msk [vmem:[#allocation2 + $0x20] sm:$0xff] %vm380_vm2, %v365_v56 }
 0x1d5   : > { %v363_v57 = vpop.permute.xlu0 %362  ;;  %v457_v58 = vpop.permute.xlu1 %456  ;;  %v489_v59 = vld [vmem:[#allocation2] sm:$0xff] }
 0x1d6   : > { %384 = vst.msk [vmem:[#allocation2 + $0x18] sm:$0xff] %vm380_vm2, %v363_v57  ;;  %729 = vmatmul.msk.f32.vlgmr.msra.gmra.mxu2 %vm504_vm4, %v489_v59 }
 0x1d7   : > { %480 = vst.msk [vmem:[#allocation2 + $0x8] sm:$0xff] %vm478_vm3, %v457_v58 }
 0x1de   : > { %v490_v60 = vld [vmem:[#allocation2 + $0x8] sm:$0xff]  ;;  %v465_v63 = vpop.permute.xlu2 %464 }
 0x1df   : > { %730 = vmatmul.msk.f32.gmra.mxu2 %vm504_vm4, %v490_v60 }
 0x1e5   : > { %v461_v61 = vpop.permute.xlu1 %460 }
 0x1e6   : > { %482 = vst.msk [vmem:[#allocation2 + $0x18] sm:$0xff] %vm478_vm3, %v461_v61  ;;  %v467_v5 = vpop.permute.xlu2 %466 }
 0x1e7   : > { %731 = vmatmul.msk.f32.gmra.mxu2 %vm504_vm4, %v491_v62 }
 0x1ed   : > { %v367_v0 = vpop.permute.xlu1 %366  ;;  %v463_v1 = vpop.permute.xlu0 %462  ;;  %v492_v2 = vld [vmem:[#allocation2 + $0x18] sm:$0xff] }
 0x1ee   : > { %386 = vst.msk [vmem:[#allocation2 + $0x28] sm:$0xff] %vm380_vm2, %v367_v0 }
 0x1ef   : > { %484 = vst.msk [vmem:[#allocation2 + $0x28] sm:$0xff] %vm478_vm3, %v465_v63  ;;  %732 = vmatmul.msk.f32.gmra.mxu2 %vm504_vm4, %v492_v2 }
 0x1f0   : > { %483 = vst.msk [vmem:[#allocation2 + $0x20] sm:$0xff] %vm478_vm3, %v463_v1 }
 0x1f5   : > { %v371_v3 = vpop.permute.xlu1 %370  ;;  %v369_v4 = vpop.permute.xlu0 %368 }
 0x1f6   : > { %388 = vst.msk [vmem:[#allocation2 + $0x38] sm:$0xff] %vm380_vm2, %v371_v3  ;;  %v494_v8 = vld [vmem:[#allocation2 + $0x28] sm:$0xff] }
 0x1f7   : > { %387 = vst.msk [vmem:[#allocation2 + $0x30] sm:$0xff] %vm380_vm2, %v369_v4  ;;  %v493_v6 = vld [vmem:[#allocation2 + $0x20] sm:$0xff] }
 0x1f8   : > { %485 = vst.msk [vmem:[#allocation2 + $0x30] sm:$0xff] %vm478_vm3, %v467_v5  ;;  %733 = vmatmul.msk.f32.gmra.mxu2 %vm504_vm4, %v493_v6 }
 0x1fd   : > { %v469_v7 = vpop.permute.xlu0 %468 }
 0x1fe   : > { %486 = vst.msk [vmem:[#allocation2 + $0x38] sm:$0xff] %vm478_vm3, %v469_v7 }
 0x1ff   : > { %v495_v10 = vld [vmem:[#allocation2 + $0x30] sm:$0xff] }
 0x200   : > { %734 = vmatmul.msk.f32.gmra.mxu2 %vm504_vm4, %v494_v8 }
 0x205   : > { %v496_v9 = vld [vmem:[#allocation2 + $0x38] sm:$0xff] }
 0x206   : > { %736 = vmatmul.msk.f32.vlgmr.msra.gmra.mxu3 %vm504_vm4, %v496_v9 }
 0x208   : > { %735 = vmatmul.msk.f32.gmra.mxu2 %vm504_vm4, %v495_v10 }
 0x259   : > { %v546_v12 = vpop.f32.mrf.mxu2 }
 0x25a   : > { %v547_v13 = vadd.f32 %v821_v11, %v546_v12 }
 0x25c   : > { %570 = vst [vmem:[%s237_s30] sm:$0xff] %v547_v13 }
 0x262   : > { %v549_v14 = vpop.f32.mrf.mxu2 }
 0x263   : > { %v550_v15 = vadd.f32 %v821_v11, %v549_v14 }
 0x265   : > { %571 = vst [vmem:[%s237_s30 + $0x8] sm:$0xff] %v550_v15 }
 0x26a   : > { %v552_v16 = vpop.f32.mrf.mxu2 }
 0x26b   : > { %v553_v17 = vadd.f32 %v821_v11, %v552_v16 }
 0x26d   : > { %572 = vst [vmem:[%s237_s30 + $0x10] sm:$0xff] %v553_v17 }
 0x272   : > { %v555_v18 = vpop.f32.mrf.mxu2 }
 0x273   : > { %v556_v19 = vadd.f32 %v821_v11, %v555_v18 }
 0x275   : > { %573 = vst [vmem:[%s237_s30 + $0x18] sm:$0xff] %v556_v19 }
 0x27b   : > { %v558_v20 = vpop.f32.mrf.mxu2 }
 0x27c   : > { %v559_v21 = vadd.f32 %v821_v11, %v558_v20 }
 0x27e   : > { %574 = vst [vmem:[%s237_s30 + $0x20] sm:$0xff] %v559_v21 }
 0x283   : > { %v561_v22 = vpop.f32.mrf.mxu2 }
 0x284   : > { %v562_v23 = vadd.f32 %v821_v11, %v561_v22 }
 0x286   : > { %575 = vst [vmem:[%s237_s30 + $0x28] sm:$0xff] %v562_v23 }
 0x289   : > { %v567_v24 = vpop.f32.mrf.mxu3 }
 0x28a   : > { %v568_v25 = vadd.f32 %v821_v11, %v567_v24 }
 0x28b   : > { %v564_v26 = vpop.f32.mrf.mxu2 }
 0x28c   : > { %v565_v27 = vadd.f32 %v821_v11, %v564_v26  ;;  %577 = vst [vmem:[%s237_s30 + $0x38] sm:$0xff] %v568_v25 }
 0x28e   : > { %576 = vst [vmem:[%s237_s30 + $0x30] sm:$0xff] %v565_v27 }
 0x28f   : > { %849 = shalt.err (!%p846_p5)
}
 0x290   : > { %s904_s22 = smov 128  }
 0x291   : > { %763 = dma.vmem_to_hbm [thread:$0]  (%p970_p4), %s595_s10, 1024, %s597_s11, %s579_s12, %s904_s22, %s904_s22, %s902_s8  }
 0x292 PF: > { %p769_p6 = scmp.ge.s32.totalorder %s900_s20, 2  ;;  %s611_s30 = sand.u32 1, %s880_s15  }
 0x293   : > { %s612_s5 = scalar_lea.sflag [#allocation4], %s611_s30 }
 0x294   : > { %p766_p7 = pnand %p769_p6, %p977_p8 }
 0x296   : > { %p767_p9 = pneg %p766_p7 }
 0x298   : > { %875 = dma.done.wait (%p767_p9), %s612_s5, 1024  }
 0x299   : > { %877 = vsyncadd (%p767_p9), %s612_s5, 4294966272  ;;  %s17_s20 = sadd.s32 1, %s900_s20   ;;  %s1189_s15 = smov %s884_s16 }
 0x29a   : > { %p14_p10 = scmp.ge.s32.totalorder %s17_s20, 4   ;;  %s1190_s16 = smov %s888_s17 }
 0x29b   : > { %s1191_s17 = smov %s983_s28  ;;  %s1192_s18 = smov %s896_s19 }
 0x29c   : > { %s1193_s19 = smov %s1195_s23  ;;  %16 = sbr.rel (!%p14_p10) target bundleno = 4 (0x4), region = 82 }
 0x2a1   :  { %618 = vsyncpa [#allocation4], 1 }
 0x2a2   :  { %620 = vsyncpa [#allocation4 + $0x1], 1 }

</bundles_post_ra>
